<compile_context>
chip_gen: v7x
topology: tpu7x:2x2x1
jax: 0.10.0
libtpu: 0.0.40
codegen_flags: <defaults>
</compile_context>

<pallas_src>
import jax
import jax.numpy as jnp
from jax.experimental import pallas as pl
from jax.experimental.pallas import tpu as pltpu


def mlp_br_fused_kernel(x_ref, w1_ref, b1_ref, w2_ref, b2_ref, o_ref):
    # x_ref:  (B, I)      bf16
    # w1_ref: (I, D*H)    bf16  -- all D first-layer weights, lane-concatenated
    # b1_ref: (1, D*H)    f32
    # w2_ref: (D*H, D*O)  bf16  -- block-diagonal second-layer weights
    # b2_ref: (1, D*O)    f32
    # o_ref:  (B, D*O)    f32   -- torch.cat(dim=1) layout, written in one slab
    x = x_ref[...]
    h = jnp.dot(x, w1_ref[...], preferred_element_type=jnp.float32)
    h = jnp.maximum(h + b1_ref[...], 0.0)                      # Linear -> ReLU
    out = jnp.dot(h.astype(w2_ref.dtype), w2_ref[...],
                  preferred_element_type=jnp.float32)
    o_ref[...] = (out + b2_ref[...]).astype(o_ref.dtype)


def mlp_br_forward(x, w1, b1, w2, b2, *, compute_dtype=jnp.bfloat16):
    """x: (B, I); w1: (D, I, H); b1: (D, H); w2: (D, H, O); b2: (D, O)
    returns (B, D*O) == torch.cat([mlp_d(x) for d in range(D)], dim=1)."""
    B, I = x.shape
    D, _, H = w1.shape
    O = w2.shape[-1]
    DH, DO = D * H, D * O

    # Layer-1 weights lane-concatenated: (I, D*H); column block d <-> MLP d.
    w1_cat = jnp.transpose(w1, (1, 0, 2)).reshape(I, DH).astype(compute_dtype)
    b1_cat = b1.reshape(1, DH).astype(jnp.float32)
    # Layer-2 weights block-diagonal: (D*H, D*O) so layer 2 is a single
    # lane-dense MXU matmul instead of D tiny (H,O) matmuls.
    w2_bd = (w2[:, :, None, :] *
             jnp.eye(D, dtype=w2.dtype)[:, None, :, None]).reshape(DH, DO)
    w2_bd = w2_bd.astype(compute_dtype)
    b2_cat = b2.reshape(1, DO).astype(jnp.float32)
    x_c = x.astype(compute_dtype)

    return pl.pallas_call(
        mlp_br_fused_kernel,
        out_shape=jax.ShapeDtypeStruct((B, DO), jnp.float32),
        grid_spec=pltpu.PrefetchScalarGridSpec(
            num_scalar_prefetch=0,
            grid=(1,),
            in_specs=[
                pl.BlockSpec((B, I), lambda i: (0, 0)),     # X (bf16)
                pl.BlockSpec((I, DH), lambda i: (0, 0)),    # W1 concat (bf16)
                pl.BlockSpec((1, DH), lambda i: (0, 0)),    # b1 concat (f32)
                pl.BlockSpec((DH, DO), lambda i: (0, 0)),   # W2 block-diag (bf16)
                pl.BlockSpec((1, DO), lambda i: (0, 0)),    # b2 concat (f32)
            ],
            out_specs=pl.BlockSpec((B, DO), lambda i: (0, 0)),
        ),
        compiler_params=pltpu.CompilerParams(
            dimension_semantics=("arbitrary",),
            vmem_limit_bytes=32 * 1024 * 1024,
        ),
    )(x_c, w1_cat, b1_cat, w2_bd, b2_cat)


def _xavier_uniform(key, shape_out_in):
    # nn.init.xavier_uniform_ on a torch Linear weight of shape (out, in).
    fan_out, fan_in = shape_out_in
    limit = (6.0 / (fan_in + fan_out)) ** 0.5
    return jax.random.uniform(key, shape_out_in, jnp.float32, -limit, limit)


def init_params(key, num_dim, input_size, hidden, output_size):
    """Deterministic synthetic params matching MLP_br.__init__ shapes."""
    w1s, b1s, w2s, b2s = [], [], [], []
    for _ in range(num_dim):
        k1, k2, k3, k4, key = jax.random.split(key, 5)
        # torch Linear stores (out, in); the kernel multiplies x @ W, so
        # transpose to (in, out).
        w1 = _xavier_uniform(k1, (hidden, input_size)).T       # (I, H)
        w2 = _xavier_uniform(k2, (output_size, hidden)).T      # (H, O)
        # torch Linear default bias init: U(-1/sqrt(fan_in), 1/sqrt(fan_in))
        b1 = jax.random.uniform(k3, (hidden,), jnp.float32,
                                -1.0 / input_size ** 0.5, 1.0 / input_size ** 0.5)
        b2 = jax.random.uniform(k4, (output_size,), jnp.float32,
                                -1.0 / hidden ** 0.5, 1.0 / hidden ** 0.5)
        w1s.append(w1); b1s.append(b1); w2s.append(w2); b2s.append(b2)
    return (jnp.stack(w1s), jnp.stack(b1s), jnp.stack(w2s), jnp.stack(b2s))


def reference_forward(x, w1, b1, w2, b2):
    # Pure-JAX f32 reference (matches the torch module exactly).
    outs = []
    for d in range(w1.shape[0]):
        h = jnp.maximum(x @ w1[d] + b1[d], 0.0)
        outs.append(h @ w2[d] + b2[d])
    return jnp.concatenate(outs, axis=1)


if __name__ == "__main__":
    # Small shapes consistent with the module:
    #   MLP_br(num_dim=3, input_size=16, output_size=8, hidden_list=[32])
    num_dim, input_size, hidden, output_size = 3, 16, 32, 8
    batch = 2

    key = jax.random.PRNGKey(0)
    kx, kp = jax.random.split(key)
    x = jax.random.normal(kx, (batch, input_size), jnp.float32)
    w1, b1, w2, b2 = init_params(kp, num_dim, input_size, hidden, output_size)

    out = mlp_br_forward(x, w1, b1, w2, b2)
    out = jax.block_until_ready(out)

    ref = reference_forward(x, w1, b1, w2, b2)
    assert out.shape == (batch, num_dim * output_size), out.shape
    # bf16 MXU inputs with f32 accumulation -> loose tolerance vs f32 reference.
    assert jnp.allclose(out, ref, atol=5e-2, rtol=5e-2), "mismatch vs reference"

    print("KERNEL_OK")
</pallas_src>

<mosaic_0001>
module attributes {stable_mosaic.version = 11 : i64} {
  func.func @mlp_br_fused_kernel(%arg0: i32, %arg1: memref<2x16xbf16, #tpu.memory_space<vmem>>, %arg2: memref<16x96xbf16, #tpu.memory_space<vmem>>, %arg3: memref<1x96xf32, #tpu.memory_space<vmem>>, %arg4: memref<96x24xbf16, #tpu.memory_space<vmem>>, %arg5: memref<1x24xf32, #tpu.memory_space<vmem>>, %arg6: memref<2x24xf32, #tpu.memory_space<vmem>>) attributes {dimension_semantics = [#tpu.dimension_semantics<arbitrary>], iteration_bounds = array<i64: 1>, scalar_prefetch = 0 : i64, scratch_operands = 0 : i64, tpu.core_type = #tpu.core_type<tc>, window_params = [{pipeline_mode = #tpu.pipeline_mode<synchronous>, transform_indices = @transform_0, window_bounds = array<i64: 2, 16>}, {pipeline_mode = #tpu.pipeline_mode<synchronous>, transform_indices = @transform_1, window_bounds = array<i64: 16, 96>}, {pipeline_mode = #tpu.pipeline_mode<synchronous>, transform_indices = @transform_2, window_bounds = array<i64: 1, 96>}, {pipeline_mode = #tpu.pipeline_mode<synchronous>, transform_indices = @transform_3, window_bounds = array<i64: 96, 24>}, {pipeline_mode = #tpu.pipeline_mode<synchronous>, transform_indices = @transform_4, window_bounds = array<i64: 1, 24>}, {pipeline_mode = #tpu.pipeline_mode<synchronous>, transform_indices = @transform_5, window_bounds = array<i64: 2, 24>}]} {
    %c0 = arith.constant 0 : index
    %c0_0 = arith.constant 0 : index
    %0 = vector.load %arg1[%c0, %c0_0] : memref<2x16xbf16, #tpu.memory_space<vmem>>, vector<2x16xbf16>
    %c0_1 = arith.constant 0 : index
    %c0_2 = arith.constant 0 : index
    %1 = vector.load %arg2[%c0_1, %c0_2] : memref<16x96xbf16, #tpu.memory_space<vmem>>, vector<16x96xbf16>
    %cst = arith.constant dense<0.000000e+00> : vector<2x96xf32>
    %2 = tpu.matmul %0, %1, %cst {dimension_numbers = #tpu.dot_dimension_numbers<[1], [0], [0], [1], [0, 0, 1, 1], [], []>} : vector<2x16xbf16>, vector<16x96xbf16>, vector<2x96xf32> -> vector<2x96xf32>
    %c0_3 = arith.constant 0 : index
    %c0_4 = arith.constant 0 : index
    %3 = vector.load %arg3[%c0_3, %c0_4] : memref<1x96xf32, #tpu.memory_space<vmem>>, vector<1x96xf32>
    %4 = vector.broadcast %3 : vector<1x96xf32> to vector<2x96xf32>
    %5 = arith.addf %2, %4 : vector<2x96xf32>
    %cst_5 = arith.constant 0.000000e+00 : f32
    %6 = vector.broadcast %cst_5 : f32 to vector<2x96xf32>
    %7 = arith.maximumf %5, %6 : vector<2x96xf32>
    %8 = arith.truncf %7 : vector<2x96xf32> to vector<2x96xbf16>
    %c0_6 = arith.constant 0 : index
    %c0_7 = arith.constant 0 : index
    %9 = vector.load %arg4[%c0_6, %c0_7] : memref<96x24xbf16, #tpu.memory_space<vmem>>, vector<96x24xbf16>
    %cst_8 = arith.constant dense<0.000000e+00> : vector<2x24xf32>
    %10 = tpu.matmul %8, %9, %cst_8 {dimension_numbers = #tpu.dot_dimension_numbers<[1], [0], [0], [1], [0, 0, 1, 1], [], []>} : vector<2x96xbf16>, vector<96x24xbf16>, vector<2x24xf32> -> vector<2x24xf32>
    %c0_9 = arith.constant 0 : index
    %c0_10 = arith.constant 0 : index
    %11 = vector.load %arg5[%c0_9, %c0_10] : memref<1x24xf32, #tpu.memory_space<vmem>>, vector<1x24xf32>
    %12 = vector.broadcast %11 : vector<1x24xf32> to vector<2x24xf32>
    %13 = arith.addf %10, %12 : vector<2x24xf32>
    %c0_11 = arith.constant 0 : index
    %c0_12 = arith.constant 0 : index
    %14 = vector.load %arg6[%c0_11, %c0_12] : memref<2x24xf32, #tpu.memory_space<vmem>>, vector<2x24xf32>
    tpu.vector_store %arg6[%c0_11, %c0_12], %13 {strides = array<i32>} : memref<2x24xf32, #tpu.memory_space<vmem>>, vector<2x24xf32>,
    return
  }
  func.func @transform_0(%arg0: i32) -> (i32, i32) {
    %c0_i32 = arith.constant 0 : i32
    %c0_i32_0 = arith.constant 0 : i32
    %c0_i32_1 = arith.constant 0 : i32
    return %c0_i32, %c0_i32_0 : i32, i32
  }
  func.func @transform_1(%arg0: i32) -> (i32, i32) {
    %c0_i32 = arith.constant 0 : i32
    %c0_i32_0 = arith.constant 0 : i32
    %c0_i32_1 = arith.constant 0 : i32
    return %c0_i32, %c0_i32_0 : i32, i32
  }
  func.func @transform_2(%arg0: i32) -> (i32, i32) {
    %c0_i32 = arith.constant 0 : i32
    %c0_i32_0 = arith.constant 0 : i32
    %c0_i32_1 = arith.constant 0 : i32
    return %c0_i32, %c0_i32_0 : i32, i32
  }
  func.func @transform_3(%arg0: i32) -> (i32, i32) {
    %c0_i32 = arith.constant 0 : i32
    %c0_i32_0 = arith.constant 0 : i32
    %c0_i32_1 = arith.constant 0 : i32
    return %c0_i32, %c0_i32_0 : i32, i32
  }
  func.func @transform_4(%arg0: i32) -> (i32, i32) {
    %c0_i32 = arith.constant 0 : i32
    %c0_i32_0 = arith.constant 0 : i32
    %c0_i32_1 = arith.constant 0 : i32
    return %c0_i32, %c0_i32_0 : i32, i32
  }
  func.func @transform_5(%arg0: i32) -> (i32, i32) {
    %c0_i32 = arith.constant 0 : i32
    %c0_i32_0 = arith.constant 0 : i32
    %c0_i32_1 = arith.constant 0 : i32
    return %c0_i32, %c0_i32_0 : i32, i32
  }
}

</mosaic_0001>

<bundles_post_ra>
// kernel: tpu_custom_call.1
= control target key start
LH: loop header
LB: loop body
LE: loop exit
PB: predicated region body
PF: predicated region fallthrough
CT: control target
= control target key end

     0   :  { %v275_v1 = vmov 0.0   ;;  %vm276_vm0 = vmmov 0   ;;  %vm38_vm1 = vcmask 130048   ;;  %s350_s0 = inlined_call_operand.vmem [shape: bf16[2,16], index: 0, kind: input, shape index: {}]   ;;  %s351_s1 = inlined_call_operand.vmem [shape: bf16[16,96], index: 1, kind: input, shape index: {}]   ;;  %s352_s2 = inlined_call_operand.vmem [shape: f32[1,96], index: 2, kind: input, shape index: {}]   ;;  %s353_s3 = inlined_call_operand.vmem [shape: bf16[96,24], index: 3, kind: input, shape index: {}]   ;;  %s354_s4 = inlined_call_operand.vmem [shape: f32[1,24], index: 4, kind: input, shape index: {}]   ;;  %s355_s5 = inlined_call_operand.hbm [shape: f32[2,24], index: 5, kind: output, shape index: {}]  }
   0x1   :  { %v244_v0 = vld [vmem:[%s351_s1] sm:$0xff]   ;;  %219 = vmatprep.subr.bf16.mxu0 %v275_v1  ;;  %225 = vmatprep.subr.bf16.mxu1 %v275_v1  ;;  %v246_v4 = vld [vmem:[%s353_s3 + $0x8] sm:$0xff]  }
   0x2   :  { %v22_v2 = vld [vmem:[%s350_s0] sm:$0x1]  ;;  %220 = vmatpush3.bf16.msra.mxu0 %v244_v0  ;;  %221 = vmatprep.mubr.msk.bf16.mxu0 %vm276_vm0, %v275_v1 }
   0x3   :  { %v245_v3 = vld [vmem:[%s353_s3] sm:$0xff]   ;;  %237 = vmatprep.mubr.msk.bf16.mxu1 %vm276_vm0, %v275_v1 }
   0x4   :  { %226 = vmatpush3.bf16.msra.mxu1 %v245_v3 }
   0x5   :  { %222 = vmatmul.mubr.msk.bf16.vlgmr.msra.gmra.mrb[0].mxu0 %vm38_vm1, %v22_v2  ;;  %227 = vmatprep.subr.bf16.mxu1 %v275_v1 }
   0x6   :  { %10 = vsyncpa [#allocation3], 0  ;;  %v247_v5 = vld [vmem:[%s353_s3 + $0x10] sm:$0xff]   ;;  %v248_v6 = vld [vmem:[%s353_s3 + $0x18] sm:$0xff]   ;;  %vm139_vm2 = vcmask 785408   ;;  %s277_s11 = smov [#allocation2]  }
   0x7   :  { %v249_v7 = vld [vmem:[%s353_s3 + $0x20] sm:$0xff]   ;;  %v250_v8 = vld [vmem:[%s353_s3 + $0x28] sm:$0xff]   ;;  %s191_s3 = sshll.u32 %s277_s11, 4  ;;  %vm183_vm3 = vcmask 189440   ;;  %s192_s3 = int_to_ptr.vmem [resolvable:$true] %s191_s3 }
   0x8   :  { %228 = vmatpush3.bf16.msra.mxu1 %v246_v4  ;;  %v199_v9 = vld [vmem:[%s352_s2] ss:$0 sm:$0xff]  ;;  %s251_s2 = scalar_lea.vmem %s192_s3, 32  ;;  %p256_p1 = scmp.lt.s32.totalorder %s192_s3, %s192_s3 }
   0x9   :  { %229 = vmatprep.subr.bf16.mxu1 %v275_v1  ;;  %v202_v17 = vld [vmem:[%s354_s4] ss:$0 sm:$0xff]  ;;  %p252_p0 = scmp.ne.s32.totalorder %s192_s3, %s251_s2  ;;  %p257_p2 = scmp.lt.s32.totalorder %s251_s2, %s251_s2 }
   0xb   :  { %p258_p3 = por %p257_p2, %p256_p1 }
   0xc   :  { %230 = vmatpush3.bf16.msra.mxu1 %v247_v5 }
   0xd   :  { %231 = vmatprep.subr.bf16.mxu1 %v275_v1  ;;  %p259_p4 = pnand %p258_p3, %p252_p0 }
  0x10   :  { %232 = vmatpush3.bf16.msra.mxu1 %v248_v6 }
  0x11   :  { %233 = vmatprep.subr.bf16.mxu1 %v275_v1 }
  0x14   :  { %234 = vmatpush3.bf16.msra.mxu1 %v249_v7 }
  0x15   :  { %235 = vmatprep.subr.bf16.mxu1 %v275_v1 }
  0x18   :  { %236 = vmatpush3.bf16.msra.mxu1 %v250_v8 }
  0xd8   :  { %v76_v10 = vpop.f32.mrb[0].mxu0 }
  0xd9   :  { %v77_v11 = vadd.f32 %v199_v9, %v76_v10  ;;  %v223_v12 = vpop.f32.mrb[1].mxu0 }
  0xda   :  { %v79_v13 = vpop.f32.mrb[2].mxu0 }
  0xdb   :  { %v82_v14 = vmax.f32 %v77_v11, 0.0  ;;  %v224_v15 = vpop.f32.mrb[3].mxu0 }
  0xdd   :  { %v83_v16 = vpack.c.bf16 %v82_v14, %v82_v14 }
  0xdf   :  { %238 = vmatmul.mubr.msk.bf16.vlgmr.msra.gmra.mrb[0].mxu1 %vm139_vm2, %v83_v16 }
 0x1b2   :  { %v177_v18 = vpop.f32.mrb[0].mxu1 }
 0x1b3   :  { %v178_v19 = vadd.f32 %v202_v17, %v177_v18  ;;  %v239_v20 = vpop.f32.mrb[1].mxu1 }
 0x1b4   :  { %v180_v21 = vpop.f32.mrb[2].mxu1 }
 0x1b5   :  { %v240_v22 = vpop.f32.mrb[3].mxu1  ;;  %184 = vst.msk [vmem:[#allocation2] sm:$0x3] %vm183_vm3, %v178_v19 }
 0x1b6   :  { %262 = shalt.err (!%p259_p4)
}
 0x1b7   :  { %s263_s4 = scalar_lea.hbm %s355_s5, 32 }
 0x1b8   :  { %p264_p5 = scmp.ne.s32.totalorder %s355_s5, %s263_s4  ;;  %p267_p6 = scmp.lt.u32.totalorder %s263_s4, %s355_s5 }
 0x1ba   :  { %p269_p7 = pnand %p267_p6, %p264_p5 }
 0x1bc   :  { %272 = shalt.err (!%p269_p7)
}
 0x1bd   :  { %194 = dma.vmem_to_hbm [thread:$0]  %s192_s3, 32, %s355_s5, [#allocation3]  }
 0x1be   :  { %273 = dma.done.wait [#allocation3], 32  }
 0x1bf   :  { %274 = vsyncadd [#allocation3], 4294967264 }
 0x1c0   :  { %198 = vsyncpa [#allocation3], 1 }

</bundles_post_ra>
